<compile_context>
chip_gen: v7x
topology: tpu7x:2x2x1
jax: 0.10.0
libtpu: 0.0.40
codegen_flags: <defaults>
</compile_context>

<pallas_src>
import jax
import jax.numpy as jnp
from jax.experimental import pallas as pl
from jax.experimental.pallas import tpu as pltpu


# ---------------------------------------------------------------------------
# Kernel
# ---------------------------------------------------------------------------
def swiglu_kernel(beta_ref, x_ref, wg_ref, wl_ref, bg_ref, bl_ref, o_ref):
    beta = beta_ref[0, 0]                         # f32 scalar from SMEM
    x = x_ref[...].astype(wg_ref.dtype)           # f32 -> bf16 on the VPU

    # Gate branch first; finish the swish before materializing the linear
    # branch so the peak live f32 temp stays ~2 * (tm, tn).
    gate = jnp.dot(x, wg_ref[...], preferred_element_type=jnp.float32)
    gate = gate + bg_ref[...]                     # (1, tn) f32 bias broadcast
    # swish(g) = g * sigmoid(beta*g) = g / (1 + exp(-beta*g)).
    # exp and the approximate reciprocal both run on the EUP slot.
    swish = gate * pl.reciprocal(1.0 + jnp.exp(-(beta * gate)), approx=True)

    lin = jnp.dot(x, wl_ref[...], preferred_element_type=jnp.float32)
    lin = lin + bl_ref[...]

    o_ref[...] = (swish * lin).astype(o_ref.dtype)


# ---------------------------------------------------------------------------
# Feature / hardware queries (done once)
# ---------------------------------------------------------------------------
def _detect_buffered_single():
    """{'pipeline_mode': pl.Buffered(1)} if supported by this jax, else {}."""
    if not hasattr(pl, "Buffered"):
        return {}
    try:
        pl.BlockSpec((8, 128), lambda i: (0, 0), pipeline_mode=pl.Buffered(1))
    except (TypeError, ValueError):
        return {}
    return {"pipeline_mode": pl.Buffered(1)}


_BUFFERED1 = _detect_buffered_single()


def _vmem_capacity_bytes():
    try:
        return int(pltpu.get_tpu_info().vmem_capacity_bytes)
    except Exception:                # info query only; fall back conservatively
        return 64 << 20              # v7x per-TensorCore VMEM (smallest part)


def _vmem_need_bytes(tm, tn, D, x_bytes, out_bytes, c_bytes, w_buffers):
    """Scoped-VMEM footprint estimate for one grid step (no double counting)."""
    x_tiles = 2 * tm * D * x_bytes                 # double-buffered x row tiles
    out_tiles = 2 * tm * tn * out_bytes            # double-buffered out tiles
    weights = w_buffers * 2 * D * tn * c_bytes     # Wg^T and W^T blocks
    biases = w_buffers * 2 * tn * 4                # f32 bias blocks
    temps = tm * D * c_bytes + 3 * tm * tn * 4     # bf16 x copy + gate/swish/lin
    return x_tiles + out_tiles + weights + biases + temps


# ---------------------------------------------------------------------------
# Wrapper
# ---------------------------------------------------------------------------
def prepare_swiglu_params(wg, bg, w, b, beta, *, compute_dtype=jnp.bfloat16):
    """One-time parameter prep (hoisted out of the per-call path): transpose the
    PyTorch (out, in) weights to (in, out) and cast them to the MXU dtype."""
    D = wg.shape[1]
    return {
        "wg_t": jnp.asarray(wg).T.astype(compute_dtype),       # (D, D)
        "wl_t": jnp.asarray(w).T.astype(compute_dtype),        # (D, D)
        "bg": jnp.asarray(bg, jnp.float32).reshape(1, D),      # (1, D)
        "bl": jnp.asarray(b, jnp.float32).reshape(1, D),       # (1, D)
        "beta": jnp.asarray(beta, jnp.float32).reshape(1, 1),  # (1, 1)
    }


def swiglu(x, params, *, tm=None, tn=None):
    """SwiGLU forward with pre-prepared params (see prepare_swiglu_params)."""
    wg_t, wl_t = params["wg_t"], params["wl_t"]
    bg, bl, beta = params["bg"], params["bl"], params["beta"]

    orig_shape = x.shape
    D = orig_shape[-1]
    assert wg_t.shape == (D, D) and wl_t.shape == (D, D), "weight/x size mismatch"
    assert D % 128 == 0, (
        f"D={D} must be a multiple of 128 for lane-aligned tiles; pad the model dim")
    x2 = x.reshape(-1, D)
    M = x2.shape[0]
    out_dtype = x.dtype

    x_bytes = jnp.dtype(x.dtype).itemsize
    c_bytes = jnp.dtype(wg_t.dtype).itemsize
    out_bytes = jnp.dtype(out_dtype).itemsize

    # Generation-aware VMEM ceiling (v5e/v6e: 128 MiB, v7x: 64 MiB) w/ headroom.
    cap = _vmem_capacity_bytes() - (8 << 20)

    # Row tile: fixed target (256 keeps the f32 temps small enough on v7x while
    # still amortizing per-step overhead), clamped to M, rounded to the sublane
    # multiple of the x dtype.  pl.cdiv grid + masked last tile handles ragged M.
    sublane = 8 if x_bytes == 4 else 16
    if tm is None:
        tm = 256
    tm = min(tm, M)
    if tm < M and tm % sublane != 0:
        tm = min(((tm + sublane - 1) // sublane) * sublane, M)

    # Output-feature tile: keep the whole (D, D) weight pair resident when it
    # fits this generation's budget, otherwise tile N so blocks are (D, tn).
    if tn is None:
        candidates = [D] + [t for t in range(D - 128, 0, -128) if D % t == 0]
        tn = None
        for t in candidates:
            w_buffers = 1 if (t == D and _BUFFERED1) else 2
            if _vmem_need_bytes(tm, t, D, x_bytes, out_bytes, c_bytes,
                                w_buffers) <= cap:
                tn = t
                break
        if tn is None:
            tn = 128                      # smallest lane-aligned tile
    tn = min(tn, D)
    assert tn % 128 == 0 and D % tn == 0, (
        f"tn={tn} must be a multiple of 128 that divides D={D}")

    n_steps = D // tn
    m_steps = pl.cdiv(M, tm)
    grid = (n_steps, m_steps)             # n outer: each weight block DMA'd once

    resident = n_steps == 1
    w_buffers = 1 if (resident and _BUFFERED1) else 2
    need = _vmem_need_bytes(tm, tn, D, x_bytes, out_bytes, c_bytes, w_buffers)
    vmem_limit = int(min(max(int(need * 1.25), 32 << 20), cap))

    # Constant-index resident weights/biases only need a single buffer.
    wspec_kwargs = _BUFFERED1 if resident else {}
    w_spec = pl.BlockSpec((D, tn), lambda n, m: (0, n), **wspec_kwargs)
    b_spec = pl.BlockSpec((1, tn), lambda n, m: (0, n), **wspec_kwargs)

    out = pl.pallas_call(
        swiglu_kernel,
        out_shape=jax.ShapeDtypeStruct((M, D), out_dtype),
        grid_spec=pltpu.PrefetchScalarGridSpec(
            num_scalar_prefetch=0,
            grid=grid,
            in_specs=[
                pl.BlockSpec(memory_space=pltpu.SMEM),         # beta (1,1) scalar
                pl.BlockSpec((tm, D), lambda n, m: (m, 0)),    # x row tile (f32)
                w_spec,                                        # Wg^T column block
                w_spec,                                        # W^T  column block
                b_spec,                                        # bg block
                b_spec,                                        # b  block
            ],
            out_specs=pl.BlockSpec((tm, tn), lambda n, m: (m, n)),
        ),
        compiler_params=pltpu.CompilerParams(
            dimension_semantics=("parallel", "parallel"),
            vmem_limit_bytes=vmem_limit),
    )(beta, x2, wg_t, wl_t, bg, bl)

    return out.reshape(orig_shape)


def swiglu_from_torch_layout(x, wg, bg, w, b, beta, **kwargs):
    """Convenience one-shot entry point: preps params then runs the kernel."""
    return swiglu(x, prepare_swiglu_params(wg, bg, w, b, beta), **kwargs)


def swiglu_ref(x, wg, bg, w, b, beta):
    gate = x @ wg.T + bg
    lin = x @ w.T + b
    return gate * jax.nn.sigmoid(beta[0] * gate) * lin


# ---------------------------------------------------------------------------
# Self-test
# ---------------------------------------------------------------------------
if __name__ == "__main__":
    key = jax.random.PRNGKey(0)
    k1, k2, k3, k4, k5 = jax.random.split(key, 5)

    batch, seq, size = 2, 8, 256        # SwiGLU(size) applied to (batch, seq, size)

    x = jax.random.normal(k1, (batch, seq, size), dtype=jnp.float32)
    # Synthetic parameters matching nn.Linear(size, size) (out, in) layout.
    wg = jax.random.normal(k2, (size, size), dtype=jnp.float32) / size ** 0.5
    bg = jax.random.normal(k3, (size,), dtype=jnp.float32) * 0.01
    w = jax.random.normal(k4, (size, size), dtype=jnp.float32) / size ** 0.5
    b = jax.random.normal(k5, (size,), dtype=jnp.float32) * 0.01
    beta = jnp.ones((1,), dtype=jnp.float32)   # nn.Parameter(torch.ones(1))

    params = prepare_swiglu_params(wg, bg, w, b, beta)   # hoisted: once per layer

    ref = swiglu_ref(x, wg, bg, w, b, beta)

    # Resident-weight path (tn == D, single n step).
    out = jax.block_until_ready(swiglu(x, params))
    assert out.shape == x.shape
    # bf16 MXU inputs + approx reciprocal -> compare at bf16-level tolerance.
    assert jnp.allclose(out, ref, atol=5e-2, rtol=5e-2), "resident path mismatch"

    # N-tiled path (forced tn < D): same kernel, multi-step (n, m) grid.
    out_tiled = jax.block_until_ready(swiglu(x, params, tm=8, tn=128))
    assert jnp.allclose(out_tiled, ref, atol=5e-2, rtol=5e-2), "tiled path mismatch"

    print("KERNEL_OK")
</pallas_src>

<mosaic_0001>
module attributes {stable_mosaic.version = 11 : i64} {
  func.func @swiglu_kernel(%arg0: i32, %arg1: i32, %arg2: memref<1x1xf32, #tpu.memory_space<smem>>, %arg3: memref<16x256xf32, #tpu.memory_space<vmem>>, %arg4: memref<256x256xbf16, #tpu.memory_space<vmem>>, %arg5: memref<256x256xbf16, #tpu.memory_space<vmem>>, %arg6: memref<1x256xf32, #tpu.memory_space<vmem>>, %arg7: memref<1x256xf32, #tpu.memory_space<vmem>>, %arg8: memref<16x256xf32, #tpu.memory_space<vmem>>) attributes {dimension_semantics = [#tpu.dimension_semantics<parallel>, #tpu.dimension_semantics<parallel>], iteration_bounds = array<i64: 1, 1>, scalar_prefetch = 0 : i64, scratch_operands = 0 : i64, tpu.core_type = #tpu.core_type<tc>, window_params = [{transform_indices = @transform_0, window_bounds = array<i64: 1, 1>}, {transform_indices = @transform_1, window_bounds = array<i64: 16, 256>}, {pipeline_mode = #tpu.pipeline_mode<synchronous>, transform_indices = @transform_2, window_bounds = array<i64: 256, 256>}, {pipeline_mode = #tpu.pipeline_mode<synchronous>, transform_indices = @transform_3, window_bounds = array<i64: 256, 256>}, {pipeline_mode = #tpu.pipeline_mode<synchronous>, transform_indices = @transform_4, window_bounds = array<i64: 1, 256>}, {pipeline_mode = #tpu.pipeline_mode<synchronous>, transform_indices = @transform_5, window_bounds = array<i64: 1, 256>}, {transform_indices = @transform_6, window_bounds = array<i64: 16, 256>}]} {
    %c0 = arith.constant 0 : index
    %c0_0 = arith.constant 0 : index
    %0 = memref.load %arg2[%c0, %c0_0] : memref<1x1xf32, #tpu.memory_space<smem>>
    %c0_1 = arith.constant 0 : index
    %c0_2 = arith.constant 0 : index
    %1 = vector.load %arg3[%c0_1, %c0_2] : memref<16x256xf32, #tpu.memory_space<vmem>>, vector<16x256xf32>
    %2 = arith.truncf %1 : vector<16x256xf32> to vector<16x256xbf16>
    %c0_3 = arith.constant 0 : index
    %c0_4 = arith.constant 0 : index
    %3 = vector.load %arg4[%c0_3, %c0_4] : memref<256x256xbf16, #tpu.memory_space<vmem>>, vector<256x256xbf16>
    %cst = arith.constant dense<0.000000e+00> : vector<16x256xf32>
    %4 = tpu.matmul %2, %3, %cst {dimension_numbers = #tpu.dot_dimension_numbers<[1], [0], [0], [1], [0, 0, 1, 1], [], []>} : vector<16x256xbf16>, vector<256x256xbf16>, vector<16x256xf32> -> vector<16x256xf32>
    %c0_5 = arith.constant 0 : index
    %c0_6 = arith.constant 0 : index
    %5 = vector.load %arg6[%c0_5, %c0_6] : memref<1x256xf32, #tpu.memory_space<vmem>>, vector<1x256xf32>
    %6 = vector.broadcast %5 : vector<1x256xf32> to vector<16x256xf32>
    %7 = arith.addf %4, %6 : vector<16x256xf32>
    %8 = vector.broadcast %0 : f32 to vector<16x256xf32>
    %9 = arith.mulf %8, %7 : vector<16x256xf32>
    %cst_7 = arith.constant 0.000000e+00 : f32
    %10 = vector.broadcast %cst_7 : f32 to vector<16x256xf32>
    %11 = arith.subf %10, %9 : vector<16x256xf32>
    %12 = math.exp %11 : vector<16x256xf32>
    %cst_8 = arith.constant 1.000000e+00 : f32
    %13 = vector.broadcast %cst_8 : f32 to vector<16x256xf32>
    %14 = arith.addf %13, %12 : vector<16x256xf32>
    %15 = tpu.reciprocal %14 {approx = true} : vector<16x256xf32> -> vector<16x256xf32>
    %16 = arith.mulf %7, %15 : vector<16x256xf32>
    %c0_9 = arith.constant 0 : index
    %c0_10 = arith.constant 0 : index
    %17 = vector.load %arg5[%c0_9, %c0_10] : memref<256x256xbf16, #tpu.memory_space<vmem>>, vector<256x256xbf16>
    %cst_11 = arith.constant dense<0.000000e+00> : vector<16x256xf32>
    %18 = tpu.matmul %2, %17, %cst_11 {dimension_numbers = #tpu.dot_dimension_numbers<[1], [0], [0], [1], [0, 0, 1, 1], [], []>} : vector<16x256xbf16>, vector<256x256xbf16>, vector<16x256xf32> -> vector<16x256xf32>
    %c0_12 = arith.constant 0 : index
    %c0_13 = arith.constant 0 : index
    %19 = vector.load %arg7[%c0_12, %c0_13] : memref<1x256xf32, #tpu.memory_space<vmem>>, vector<1x256xf32>
    %20 = vector.broadcast %19 : vector<1x256xf32> to vector<16x256xf32>
    %21 = arith.addf %18, %20 : vector<16x256xf32>
    %22 = arith.mulf %16, %21 : vector<16x256xf32>
    %c0_14 = arith.constant 0 : index
    %c0_15 = arith.constant 0 : index
    %23 = vector.load %arg8[%c0_14, %c0_15] : memref<16x256xf32, #tpu.memory_space<vmem>>, vector<16x256xf32>
    tpu.vector_store %arg8[%c0_14, %c0_15], %22 {strides = array<i32>} : memref<16x256xf32, #tpu.memory_space<vmem>>, vector<16x256xf32>,
    return
  }
  func.func @transform_0(%arg0: i32, %arg1: i32) -> (i32, i32) {
    %c0_i32 = arith.constant 0 : i32
    %c0_i32_0 = arith.constant 0 : i32
    %c0_i32_1 = arith.constant 0 : i32
    return %c0_i32, %c0_i32_0 : i32, i32
  }
  func.func @transform_1(%arg0: i32, %arg1: i32) -> (i32, i32) {
    %c0_i32 = arith.constant 0 : i32
    %c0_i32_0 = arith.constant 0 : i32
    return %arg1, %c0_i32 : i32, i32
  }
  func.func @transform_2(%arg0: i32, %arg1: i32) -> (i32, i32) {
    %c0_i32 = arith.constant 0 : i32
    %c0_i32_0 = arith.constant 0 : i32
    return %c0_i32, %arg0 : i32, i32
  }
  func.func @transform_3(%arg0: i32, %arg1: i32) -> (i32, i32) {
    %c0_i32 = arith.constant 0 : i32
    %c0_i32_0 = arith.constant 0 : i32
    return %c0_i32, %arg0 : i32, i32
  }
  func.func @transform_4(%arg0: i32, %arg1: i32) -> (i32, i32) {
    %c0_i32 = arith.constant 0 : i32
    %c0_i32_0 = arith.constant 0 : i32
    return %c0_i32, %arg0 : i32, i32
  }
  func.func @transform_5(%arg0: i32, %arg1: i32) -> (i32, i32) {
    %c0_i32 = arith.constant 0 : i32
    %c0_i32_0 = arith.constant 0 : i32
    return %c0_i32, %arg0 : i32, i32
  }
  func.func @transform_6(%arg0: i32, %arg1: i32) -> (i32, i32) {
    %c0_i32 = arith.constant 0 : i32
    return %arg1, %arg0 : i32, i32
  }
}

</mosaic_0001>

<bundles_post_ra>
// kernel: tpu_custom_call.1
= control target key start
LH: loop header
LB: loop body
LE: loop exit
PB: predicated region body
PF: predicated region fallthrough
CT: control target
= control target key end

     0   :  { %12 = vsyncpa [#allocation4], 0  ;;  %s1012_s0 = inlined_call_operand.<no memory space> [shape: f32[1,1], index: 0, kind: input, shape index: {}]   ;;  %s1013_s1 = inlined_call_operand.hbm [shape: f32[16,256], index: 1, kind: input, shape index: {}]   ;;  %s1014_s2 = inlined_call_operand.hbm [shape: bf16[256,256], index: 2, kind: input, shape index: {}]   ;;  %s1015_s3 = inlined_call_operand.hbm [shape: bf16[256,256], index: 3, kind: input, shape index: {}]   ;;  %s1016_s4 = inlined_call_operand.vmem [shape: f32[1,256], index: 4, kind: input, shape index: {}]   ;;  %s1017_s5 = inlined_call_operand.vmem [shape: f32[1,256], index: 5, kind: input, shape index: {}]   ;;  %s1018_s6 = inlined_call_operand.hbm [shape: f32[16,256], index: 6, kind: output, shape index: {}]  }
   0x1   :  { %13 = vsyncpa [#allocation7], 0 }
   0x2   :  { %14 = vsyncpa [#allocation5], 0  ;;  %s900_s21 = smov [#allocation6]   ;;  %s806_s25 = scalar_lea.hbm %s1014_s2, 4096 }
   0x3   :  { %s34_s22 = sshll.u32 %s900_s21, 4  ;;  %p807_p0 = scmp.ne.s32.totalorder %s1014_s2, %s806_s25  ;;  %s35_s22 = int_to_ptr.vmem [resolvable:$true] %s34_s22 }
   0x4   :  { %p810_p1 = scmp.lt.u32.totalorder %s806_s25, %s1014_s2 }
   0x6   :  { %p812_p2 = pnand %p810_p1, %p807_p0 }
   0x8   :  { %815 = shalt.err (!%p812_p2)
}
   0x9   :  { %s816_s30 = scalar_lea.vmem %s35_s22, 4096  ;;  %p821_p4 = scmp.lt.s32.totalorder %s35_s22, %s35_s22 }
   0xa   :  { %p817_p3 = scmp.ne.s32.totalorder %s35_s22, %s816_s30  ;;  %p822_p5 = scmp.lt.s32.totalorder %s816_s30, %s816_s30 }
   0xc   :  { %p823_p6 = por %p822_p5, %p821_p4 }
   0xe   :  { %p824_p7 = pnand %p823_p6, %p817_p3 }
  0x10   :  { %827 = shalt.err (!%p824_p7)
}
  0x11   :  { %s901_s7 = smov 128   ;;  %s902_s8 = smov 8  }
  0x12   :  { %40 = dma.hbm_to_vmem [thread:$0]  %s1014_s2, 4096, %s35_s22, [#allocation7], %s901_s7, %s901_s7, %s902_s8  }
  0x13   :  { %s903_s11 = smov [#allocation3]   ;;  %s828_s15 = scalar_lea.hbm %s1013_s1, 512 }
  0x14   :  { %s22_s12 = sshll.u32 %s903_s11, 4  ;;  %p829_p8 = scmp.ne.s32.totalorder %s1013_s1, %s828_s15  ;;  %s23_s12 = int_to_ptr.vmem [resolvable:$true] %s22_s12 }
  0x15   :  { %p832_p9 = scmp.lt.u32.totalorder %s828_s15, %s1013_s1 }
  0x17   :  { %p834_p10 = pnand %p832_p9, %p829_p8 }
  0x19   :  { %837 = shalt.err (!%p834_p10)
}
  0x1a   :  { %s838_s20 = scalar_lea.vmem %s23_s12, 512  ;;  %p843_p12 = scmp.lt.s32.totalorder %s23_s12, %s23_s12 }
  0x1b   :  { %p839_p11 = scmp.ne.s32.totalorder %s23_s12, %s838_s20  ;;  %p844_p13 = scmp.lt.s32.totalorder %s838_s20, %s838_s20 }
  0x1d   :  { %p845_p0 = por %p844_p13, %p843_p12 }
  0x1f   :  { %p846_p1 = pnand %p845_p0, %p839_p11 }
  0x21   :  { %849 = shalt.err (!%p846_p1)
}
  0x22   :  { %s904_s2 = smov 256   ;;  %s905_s21 = smov 16  }
  0x23   :  { %28 = dma.hbm_to_vmem [thread:$0]  %s1013_s1, 512, %s23_s12, [#allocation4], %s904_s2, %s904_s2, %s905_s21  }
  0x24   :  { %s906_s24 = smov [#allocation8]   ;;  %s850_s28 = scalar_lea.hbm %s1015_s3, 4096 }
  0x25   :  { %s46_s25 = sshll.u32 %s906_s24, 4  ;;  %p851_p2 = scmp.ne.s32.totalorder %s1015_s3, %s850_s28  ;;  %s47_s25 = int_to_ptr.vmem [resolvable:$true] %s46_s25 }
  0x26   :  { %p854_p3 = scmp.lt.u32.totalorder %s850_s28, %s1015_s3 }
  0x28   :  { %p856_p4 = pnand %p854_p3, %p851_p2 }
  0x2a   :  { %859 = shalt.err (!%p856_p4)
}
  0x2b   :  { %s860_s11 = scalar_lea.vmem %s47_s25, 4096  ;;  %p865_p6 = scmp.lt.s32.totalorder %s47_s25, %s47_s25 }
  0x2c   :  { %p861_p5 = scmp.ne.s32.totalorder %s47_s25, %s860_s11  ;;  %p866_p7 = scmp.lt.s32.totalorder %s860_s11, %s860_s11 }
  0x2e   :  { %p867_p8 = por %p866_p7, %p865_p6 }
  0x30   :  { %p868_p9 = pnand %p867_p8, %p861_p5 }
  0x32   :  { %871 = shalt.err (!%p868_p9)
}
  0x33   :  { %52 = dma.hbm_to_vmem [thread:$0]  %s1015_s3, 4096, %s47_s25, [#allocation7], %s901_s7, %s901_s7, %s902_s8  }
  0x34   :  { %894 = dma.done.wait [#allocation4], 512  }
  0x35   :  { %895 = vsyncadd [#allocation4], 4294966784 }
  0x36   :  { %896 = dma.done.wait [#allocation7], 8192  }
  0x37   :  { %897 = vsyncadd [#allocation7], 4294959104  ;;  %v694_v0 = vld [vmem:[#allocation6 + $0x4] ss:$8 sps:$4 sm:$0xff]   ;;  %v696_v1 = vld [vmem:[#allocation6] ss:$8 sps:$4 sm:$0xff]  }
  0x38   :  { %277 = vmatprep.subr.bf16.mxu0 %v694_v0  ;;  %v697_v2 = vld [vmem:[#allocation6 + $0x14] ss:$8 sps:$4 sm:$0xff]   ;;  %v699_v3 = vld [vmem:[#allocation6 + $0x10] ss:$8 sps:$4 sm:$0xff]   ;;  %v700_v4 = vld [vmem:[#allocation6 + $0x24] ss:$8 sps:$4 sm:$0xff]  }
  0x39   :  { %278 = vmatpush1.bf16.msra.mxu0 %v696_v1  ;;  %v702_v5 = vld [vmem:[#allocation6 + $0x20] ss:$8 sps:$4 sm:$0xff]   ;;  %v703_v6 = vld [vmem:[#allocation6 + $0x34] ss:$8 sps:$4 sm:$0xff]   ;;  %v705_v7 = vld [vmem:[#allocation6 + $0x30] ss:$8 sps:$4 sm:$0xff]  }
  0x3a   :  { %279 = vmatprep.subr.bf16.mxu0 %v697_v2  ;;  %v718_v8 = vld [vmem:[#allocation8 + $0x4] ss:$8 sps:$4 sm:$0xff]   ;;  %v720_v9 = vld [vmem:[#allocation8] ss:$8 sps:$4 sm:$0xff]   ;;  %v724_v11 = vld [vmem:[#allocation8 + $0x14] ss:$8 sps:$4 sm:$0xff]  }
  0x3b   :  { %v706_v10 = vld [vmem:[#allocation6 + $0x44] ss:$8 sps:$4 sm:$0xff]   ;;  %553 = vmatprep.subr.bf16.mxu1 %v718_v8  ;;  %v726_v12 = vld [vmem:[#allocation8 + $0x10] ss:$8 sps:$4 sm:$0xff]   ;;  %v708_v13 = vld [vmem:[#allocation6 + $0x40] ss:$8 sps:$4 sm:$0xff]  }
  0x3c   :  { %554 = vmatpush1.bf16.msra.mxu1 %v720_v9  ;;  %v709_v14 = vld [vmem:[#allocation6 + $0x54] ss:$8 sps:$4 sm:$0xff]   ;;  %v730_v15 = vld [vmem:[#allocation8 + $0x24] ss:$8 sps:$4 sm:$0xff]   ;;  %v732_v16 = vld [vmem:[#allocation8 + $0x20] ss:$8 sps:$4 sm:$0xff]  }
  0x3d   :  { %280 = vmatpush1.bf16.msra.mxu0 %v699_v3  ;;  %555 = vmatprep.subr.bf16.mxu1 %v724_v11  ;;  %v711_v17 = vld [vmem:[#allocation6 + $0x50] ss:$8 sps:$4 sm:$0xff]   ;;  %v736_v18 = vld [vmem:[#allocation8 + $0x34] ss:$8 sps:$4 sm:$0xff]   ;;  %v712_v19 = vld [vmem:[#allocation6 + $0x64] ss:$8 sps:$4 sm:$0xff]  }
  0x3e   :  { %281 = vmatprep.subr.bf16.mxu0 %v700_v4  ;;  %v738_v20 = vld [vmem:[#allocation8 + $0x30] ss:$8 sps:$4 sm:$0xff]   ;;  %v714_v21 = vld [vmem:[#allocation6 + $0x60] ss:$8 sps:$4 sm:$0xff]   ;;  %v742_v22 = vld [vmem:[#allocation8 + $0x44] ss:$8 sps:$4 sm:$0xff]  }
  0x3f   :  { %v715_v23 = vld [vmem:[#allocation6 + $0x74] ss:$8 sps:$4 sm:$0xff]   ;;  %v744_v24 = vld [vmem:[#allocation8 + $0x40] ss:$8 sps:$4 sm:$0xff]   ;;  %v717_v25 = vld [vmem:[#allocation6 + $0x70] ss:$8 sps:$4 sm:$0xff]  }
  0x40   :  { %556 = vmatpush1.bf16.msra.mxu1 %v726_v12  ;;  %v748_v26 = vld [vmem:[#allocation8 + $0x54] ss:$8 sps:$4 sm:$0xff]   ;;  %v721_v27 = vld [vmem:[#allocation6 + $0x84] ss:$8 sps:$4 sm:$0xff]   ;;  %v750_v28 = vld [vmem:[#allocation8 + $0x50] ss:$8 sps:$4 sm:$0xff]  }
  0x41   :  { %282 = vmatpush1.bf16.msra.mxu0 %v702_v5  ;;  %557 = vmatprep.subr.bf16.mxu1 %v730_v15  ;;  %v723_v29 = vld [vmem:[#allocation6 + $0x80] ss:$8 sps:$4 sm:$0xff]   ;;  %v754_v30 = vld [vmem:[#allocation8 + $0x64] ss:$8 sps:$4 sm:$0xff]   ;;  %v727_v31 = vld [vmem:[#allocation6 + $0x94] ss:$8 sps:$4 sm:$0xff]  }
  0x42   :  { %283 = vmatprep.subr.bf16.mxu0 %v703_v6  ;;  %v68_v32 = vld [vmem:[#allocation3 + $0x8] sm:$0xff]  ;;  %v70_v33 = vld [vmem:[#allocation3 + $0x18] sm:$0xff]  ;;  %v67_v61 = vld [vmem:[#allocation3] sm:$0xff]  ;;  %v107_v6 = vlaneseq  ;;  %s907_s14 = smov [#allocation9]  }
  0x43   :  { %v756_v34 = vld [vmem:[#allocation8 + $0x60] ss:$8 sps:$4 sm:$0xff]   ;;  %v72_v35 = vpack.c.bf16 %v70_v33, %v68_v32  ;;  %v729_v36 = vld [vmem:[#allocation6 + $0x90] ss:$8 sps:$4 sm:$0xff]   ;;  %v760_v37 = vld [vmem:[#allocation8 + $0x74] ss:$8 sps:$4 sm:$0xff]  }
  0x44   :  { %558 = vmatpush1.bf16.msra.mxu1 %v732_v16  ;;  %v733_v38 = vld [vmem:[#allocation6 + $0xa4] ss:$8 sps:$4 sm:$0xff]   ;;  %v762_v39 = vld [vmem:[#allocation8 + $0x70] ss:$8 sps:$4 sm:$0xff]   ;;  %v735_v40 = vld [vmem:[#allocation6 + $0xa0] ss:$8 sps:$4 sm:$0xff]  }
  0x45   :  { %284 = vmatpush1.bf16.msra.mxu0 %v705_v7  ;;  %559 = vmatprep.subr.bf16.mxu1 %v736_v18  ;;  %v766_v41 = vld [vmem:[#allocation8 + $0x84] ss:$8 sps:$4 sm:$0xff]   ;;  %v739_v42 = vld [vmem:[#allocation6 + $0xb4] ss:$8 sps:$4 sm:$0xff]   ;;  %v768_v43 = vld [vmem:[#allocation8 + $0x80] ss:$8 sps:$4 sm:$0xff]  }
  0x46   :  { %285 = vmatprep.subr.bf16.mxu0 %v706_v10  ;;  %309 = vmatprep.mubr.bf16.mxu0 %v72_v35  ;;  %v741_v44 = vld [vmem:[#allocation6 + $0xb0] ss:$8 sps:$4 sm:$0xff]   ;;  %v769_v45 = vld [vmem:[#allocation8 + $0x94] ss:$8 sps:$4 sm:$0xff]   ;;  %v745_v46 = vld [vmem:[#allocation6 + $0xc4] ss:$8 sps:$4 sm:$0xff]  }
  0x47   :  { %585 = vmatprep.mubr.bf16.mxu1 %v72_v35  ;;  %v771_v47 = vld [vmem:[#allocation8 + $0x90] ss:$8 sps:$4 sm:$0xff]   ;;  %v747_v48 = vld [vmem:[#allocation6 + $0xc0] ss:$8 sps:$4 sm:$0xff]   ;;  %v772_v49 = vld [vmem:[#allocation8 + $0xa4] ss:$8 sps:$4 sm:$0xff]  }
  0x48   :  { %560 = vmatpush1.bf16.msra.mxu1 %v738_v20  ;;  %v751_v50 = vld [vmem:[#allocation6 + $0xd4] ss:$8 sps:$4 sm:$0xff]   ;;  %v774_v51 = vld [vmem:[#allocation8 + $0xa0] ss:$8 sps:$4 sm:$0xff]   ;;  %v753_v52 = vld [vmem:[#allocation6 + $0xd0] ss:$8 sps:$4 sm:$0xff]  }
  0x49   :  { %286 = vmatpush1.bf16.msra.mxu0 %v708_v13  ;;  %561 = vmatprep.subr.bf16.mxu1 %v742_v22  ;;  %v775_v53 = vld [vmem:[#allocation8 + $0xb4] ss:$8 sps:$4 sm:$0xff]   ;;  %v757_v54 = vld [vmem:[#allocation6 + $0xe4] ss:$8 sps:$4 sm:$0xff]   ;;  %v777_v55 = vld [vmem:[#allocation8 + $0xb0] ss:$8 sps:$4 sm:$0xff]  }
  0x4a   :  { %287 = vmatprep.subr.bf16.mxu0 %v709_v14  ;;  %v759_v56 = vld [vmem:[#allocation6 + $0xe0] ss:$8 sps:$4 sm:$0xff]   ;;  %v778_v57 = vld [vmem:[#allocation8 + $0xc4] ss:$8 sps:$4 sm:$0xff]   ;;  %v763_v58 = vld [vmem:[#allocation6 + $0xf4] ss:$8 sps:$4 sm:$0xff]   ;;  %v320_v14 = vstv %s1012_s0 }
  0x4b   :  { %v765_v59 = vld [vmem:[#allocation6 + $0xf0] ss:$8 sps:$4 sm:$0xff]   ;;  %v780_v60 = vld [vmem:[#allocation8 + $0xc0] ss:$8 sps:$4 sm:$0xff]   ;;  %v781_v63 = vld [vmem:[#allocation8 + $0xd4] ss:$8 sps:$4 sm:$0xff]  }
  0x4c   :  { %562 = vmatpush1.bf16.msra.mxu1 %v744_v24  ;;  %v69_v62 = vld [vmem:[#allocation3 + $0x10] sm:$0xff]  ;;  %v784_v2 = vld [vmem:[#allocation8 + $0xe4] ss:$8 sps:$4 sm:$0xff]   ;;  %v786_v3 = vld [vmem:[#allocation8 + $0xe0] ss:$8 sps:$4 sm:$0xff]   ;;  %v108_v7 = vshrl.u32 %v107_v6, 7 }
  0x4d   :  { %288 = vmatpush1.bf16.msra.mxu0 %v711_v17  ;;  %563 = vmatprep.subr.bf16.mxu1 %v748_v26  ;;  %v71_v0 = vpack.c.bf16 %v69_v62, %v67_v61  ;;  %v783_v1 = vld [vmem:[#allocation8 + $0xd0] ss:$8 sps:$4 sm:$0xff]   ;;  %v787_v4 = vld [vmem:[#allocation8 + $0xf4] ss:$8 sps:$4 sm:$0xff]   ;;  %v105_v9 = vld [vmem:[%s1016_s4] sm:$0x3] }
  0x4e   :  { %289 = vmatprep.subr.bf16.mxu0 %v712_v19  ;;  %v789_v5 = vld [vmem:[#allocation8 + $0xf0] ss:$8 sps:$4 sm:$0xff]   ;;  %v109_v8 = vsub.s32 0, %v108_v7  ;;  %v113_v10 = vsub.s32 1, %v108_v7  ;;  %s609_s15 = sshll.u32 %s907_s14, 4  ;;  %s610_s15 = int_to_ptr.vmem [resolvable:$true] %s609_s15 }
  0x4f   :  { %p877_p11 = scmp.lt.s32.totalorder %s610_s15, %s610_s15 }
  0x50   :  { %564 = vmatpush1.bf16.msra.mxu1 %v750_v28  ;;  %v110_v11 = vrot.slane %v105_v9, %v109_v8  ;;  %v114_v12 = vrot.slane %v105_v9, %v113_v10 }
  0x51   :  { %290 = vmatpush1.bf16.msra.mxu0 %v714_v21  ;;  %565 = vmatprep.subr.bf16.mxu1 %v754_v30 }
  0x52   :  { %291 = vmatprep.subr.bf16.mxu0 %v715_v23 }
  0x54   :  { %566 = vmatpush1.bf16.msra.mxu1 %v756_v34 }
  0x55   :  { %292 = vmatpush1.bf16.msra.mxu0 %v717_v25  ;;  %567 = vmatprep.subr.bf16.mxu1 %v760_v37 }
  0x56   :  { %293 = vmatprep.subr.bf16.mxu0 %v721_v27 }
  0x58   :  { %568 = vmatpush1.bf16.msra.mxu1 %v762_v39 }
  0x59   :  { %294 = vmatpush1.bf16.msra.mxu0 %v723_v29  ;;  %569 = vmatprep.subr.bf16.mxu1 %v766_v41 }
  0x5a   :  { %295 = vmatprep.subr.bf16.mxu0 %v727_v31 }
  0x5c   :  { %570 = vmatpush1.bf16.msra.mxu1 %v768_v43 }
  0x5d   :  { %296 = vmatpush1.bf16.msra.mxu0 %v729_v36  ;;  %571 = vmatprep.subr.bf16.mxu1 %v769_v45 }
  0x5e   :  { %297 = vmatprep.subr.bf16.mxu0 %v733_v38 }
  0x60   :  { %572 = vmatpush1.bf16.msra.mxu1 %v771_v47 }
  0x61   :  { %298 = vmatpush1.bf16.msra.mxu0 %v735_v40  ;;  %573 = vmatprep.subr.bf16.mxu1 %v772_v49 }
  0x62   :  { %299 = vmatprep.subr.bf16.mxu0 %v739_v42 }
  0x64   :  { %574 = vmatpush1.bf16.msra.mxu1 %v774_v51 }
  0x65   :  { %300 = vmatpush1.bf16.msra.mxu0 %v741_v44  ;;  %575 = vmatprep.subr.bf16.mxu1 %v775_v53 }
  0x66   :  { %301 = vmatprep.subr.bf16.mxu0 %v745_v46  ;;  %v381_v46 = vld [vmem:[%s1017_s5] sm:$0x3]  ;;  %s872_s5 = scalar_lea.vmem %s610_s15, 512 }
  0x67   :  { %v386_v47 = vrot.slane %v381_v46, %v109_v8  ;;  %p873_p10 = scmp.ne.s32.totalorder %s610_s15, %s872_s5  ;;  %p878_p12 = scmp.lt.s32.totalorder %s872_s5, %s872_s5 }
  0x68   :  { %576 = vmatpush1.bf16.msra.mxu1 %v777_v55 }
  0x69   :  { %302 = vmatpush1.bf16.msra.mxu0 %v747_v48  ;;  %577 = vmatprep.subr.bf16.mxu1 %v778_v57  ;;  %v390_v48 = vrot.slane %v381_v46, %v113_v10  ;;  %p879_p13 = por %p878_p12, %p877_p11 }
  0x6a   :  { %303 = vmatprep.subr.bf16.mxu0 %v751_v50 }
  0x6b   :  { %p880_p0 = pnand %p879_p13, %p873_p10 }
  0x6c   :  { %578 = vmatpush1.bf16.msra.mxu1 %v780_v60 }
  0x6d   :  { %304 = vmatpush1.bf16.msra.mxu0 %v753_v52  ;;  %579 = vmatprep.subr.bf16.mxu1 %v781_v63 }
  0x6e   :  { %305 = vmatprep.subr.bf16.mxu0 %v757_v54 }
  0x70   :  { %580 = vmatpush1.bf16.msra.mxu1 %v783_v1 }
  0x71   :  { %306 = vmatpush1.bf16.msra.mxu0 %v759_v56  ;;  %581 = vmatprep.subr.bf16.mxu1 %v784_v2 }
  0x72   :  { %307 = vmatprep.subr.bf16.mxu0 %v763_v58 }
  0x74   :  { %582 = vmatpush1.bf16.msra.mxu1 %v786_v3 }
  0x75   :  { %308 = vmatpush1.bf16.msra.mxu0 %v765_v59  ;;  %583 = vmatprep.subr.bf16.mxu1 %v787_v4 }
  0x78   :  { %310 = vmatmul.mubr.bf16.vlgmr.msra.gmra.mrb[0].mxu0 %v71_v0  ;;  %584 = vmatpush1.bf16.msra.mxu1 %v789_v5 }
  0x7b   :  { %586 = vmatmul.mubr.bf16.vlgmr.msra.gmra.mrb[0].mxu1 %v71_v0 }
 0x14b   :  { %v311_v13 = vpop.f32.mrb[0].mxu0 }
 0x14c   :  { %v312_v15 = vadd.f32 %v311_v13, %v110_v11  ;;  %v313_v16 = vpop.f32.mrb[1].mxu0 }
 0x14d   :  { %v314_v17 = vadd.f32 %v313_v16, %v114_v12  ;;  %v315_v18 = vpop.f32.mrb[2].mxu0 }
 0x14e   :  { %v321_v19 = vmul.f32 %v320_v14, %v312_v15  ;;  %v316_v20 = vadd.f32 %v315_v18, %v110_v11  ;;  %v317_v21 = vpop.f32.mrb[3].mxu0  ;;  %v587_v34 = vpop.f32.mrb[0].mxu1 }
 0x14f   :  { %v322_v22 = vmul.f32 %v320_v14, %v314_v17  ;;  %v318_v23 = vadd.f32 %v317_v21, %v114_v12  ;;  %v589_v35 = vpop.f32.mrb[1].mxu1  ;;  %v588_v49 = vadd.f32 %v587_v34, %v386_v47 }
 0x150   :  { %v325_v24 = vsub.f32 0.0, %v321_v19  ;;  %v323_v25 = vmul.f32 %v320_v14, %v316_v20  ;;  %v591_v36 = vpop.f32.mrb[2].mxu1  ;;  %v590_v51 = vadd.f32 %v589_v35, %v390_v48 }
 0x151   :  { %v326_v26 = vsub.f32 0.0, %v322_v22  ;;  %v324_v27 = vmul.f32 %v320_v14, %v318_v23  ;;  %v593_v37 = vpop.f32.mrb[3].mxu1  ;;  %v592_v59 = vadd.f32 %v591_v36, %v386_v47 }
 0x152   :  { %v329_v28 = vmul.f32 1.442695, %v325_v24  ;;  %v327_v29 = vsub.f32 0.0, %v323_v25  ;;  %v594_v62 = vadd.f32 %v593_v37, %v390_v48 }
 0x153   :  { %v331_v30 = vmul.f32 1.442695, %v326_v26  ;;  %v328_v31 = vsub.f32 0.0, %v324_v27 }
 0x154   :  { %790 = vpow2.f32 %v329_v28  ;;  %v333_v32 = vmul.f32 1.442695, %v327_v29 }
 0x155   :  { %792 = vpow2.f32 %v331_v30  ;;  %v335_v33 = vmul.f32 1.442695, %v328_v31 }
 0x156   :  { %794 = vpow2.f32 %v333_v32 }
 0x157   :  { %796 = vpow2.f32 %v335_v33 }
 0x15e   :  { %v791_v38 = vpop.eup %790 }
 0x15f   :  { %v793_v39 = vpop.eup %792  ;;  %v337_v40 = vadd.f32 1.0, %v791_v38 }
 0x160   :  { %v795_v41 = vpop.eup %794  ;;  %v338_v42 = vadd.f32 1.0, %v793_v39 }
 0x161   :  { %v797_v43 = vpop.eup %796  ;;  %798 = vrcp.f32 %v337_v40  ;;  %v339_v44 = vadd.f32 1.0, %v795_v41 }
 0x162   :  { %800 = vrcp.f32 %v338_v42  ;;  %v340_v45 = vadd.f32 1.0, %v797_v43 }
 0x163   :  { %802 = vrcp.f32 %v339_v44 }
 0x164   :  { %804 = vrcp.f32 %v340_v45 }
 0x16b   :  { %v799_v50 = vpop.eup %798 }
 0x16c   :  { %v801_v52 = vpop.eup %800  ;;  %v345_v53 = vmul.f32 %v799_v50, %v312_v15 }
 0x16d   :  { %v803_v54 = vpop.eup %802  ;;  %v346_v55 = vmul.f32 %v801_v52, %v314_v17 }
 0x16e   :  { %v805_v56 = vpop.eup %804  ;;  %v347_v57 = vmul.f32 %v803_v54, %v316_v20  ;;  %v596_v58 = vmul.f32 %v588_v49, %v345_v53 }
 0x16f   :  { %v348_v60 = vmul.f32 %v805_v56, %v318_v23  ;;  %v597_v61 = vmul.f32 %v590_v51, %v346_v55 }
 0x170   :  { %600 = vst [vmem:[#allocation9] sm:$0xff] %v596_v58  ;;  %v598_v63 = vmul.f32 %v592_v59, %v347_v57 }
 0x171   :  { %601 = vst [vmem:[#allocation9 + $0x8] sm:$0xff] %v597_v61  ;;  %v599_v0 = vmul.f32 %v594_v62, %v348_v60 }
 0x172   :  { %602 = vst [vmem:[#allocation9 + $0x10] sm:$0xff] %v598_v63 }
 0x173   :  { %603 = vst [vmem:[#allocation9 + $0x18] sm:$0xff] %v599_v0 }
 0x174   :  { %883 = shalt.err (!%p880_p0)
}
 0x175   :  { %s884_s18 = scalar_lea.hbm %s1018_s6, 512 }
 0x176   :  { %p885_p1 = scmp.ne.s32.totalorder %s1018_s6, %s884_s18  ;;  %p888_p2 = scmp.lt.u32.totalorder %s884_s18, %s1018_s6 }
 0x178   :  { %p890_p3 = pnand %p888_p2, %p885_p1 }
 0x17a   :  { %893 = shalt.err (!%p890_p3)
}
 0x17b   :  { %615 = dma.vmem_to_hbm [thread:$0]  %s610_s15, 512, %s1018_s6, [#allocation5], %s904_s2, %s904_s2, %s905_s21  }
 0x17c   :  { %898 = dma.done.wait [#allocation5], 512  }
 0x17d   :  { %899 = vsyncadd [#allocation5], 4294966784 }
 0x17e   :  { %619 = vsyncpa [#allocation4], 1 }
 0x17f   :  { %620 = vsyncpa [#allocation7], 1 }
 0x180   :  { %621 = vsyncpa [#allocation5], 1 }

</bundles_post_ra>
